<compile_context>
chip_gen: v5e
topology: v5e:2x2
jax: 0.10.0
libtpu: 0.0.40
codegen_flags: <defaults>
</compile_context>

<pallas_src>
import math

import jax
import jax.numpy as jnp
from jax.experimental import pallas as pl
from jax.experimental.pallas import tpu as pltpu


def _round_up(x, m):
    return ((x + m - 1) // m) * m


def _choose_tile_b(B, K, D, sparse_itemsize):
    """Batch-tile (lane) width chosen by streamed bytes, not row count."""
    # Bytes streamed per batch column: sparse + sublane-padded f32 dense + out.
    bytes_per_col = K * sparse_itemsize + max(D, 8) * 4 + 4
    # ~4 MiB streamed per grid step: amortizes ~0.35us step overhead; the
    # double-buffered VMEM footprint (~2x that) stays well under v7x's 64 MiB.
    tb = (4 << 20) // max(bytes_per_col, 1)
    tb = max(512, min(tb, 32768))
    tb = _round_up(tb, 128)
    # Keep >= ~8 grid steps when the batch allows it, so v7x's two TensorCores
    # can split the "parallel" batch axis (harmless on single-TC v5e/v6e).
    eight_way = _round_up(pl.cdiv(B, 8), 128)
    if eight_way >= 512:
        tb = min(tb, eight_way)
    # Small batches: a single exact tile (block dim == array dim keeps the
    # (8,128) layout rule satisfied without any padding pass).
    if B <= tb:
        tb = B if B < 128 else _round_up(B, 128)
    return max(tb, 1)


def fm_kernel(dense_t_ref, sparse_t_ref, w_ref, b_ref, out_ref):
    """Fused FM forward for one batch tile (batch on the lane axis).

    dense_t_ref : [D, TB]  f32  VMEM   (dense features, transposed)
    sparse_t_ref: [K, TB]  bf16 VMEM   (concatenated embeddings, K = F*E, transposed)
    w_ref       : [D, 1]   f32  VMEM   (linear weight as a column, resident)
    b_ref       : [1, 1]   f32  SMEM   (linear bias, scalar)
    out_ref     : [1, TB]  f32  VMEM   (lane-dense output row)
    """
    # Upcast once; keep every accumulation and the cancellation-sensitive
    # (s*s - sq) subtraction in float32.
    x = sparse_t_ref[...].astype(jnp.float32)          # [K, TB]

    # First-order term: D full-width VPU multiply-adds + tiny sublane reduce.
    lin = jnp.sum(dense_t_ref[...] * w_ref[...], axis=0, keepdims=True) + b_ref[0, 0]

    # Second-order cross term over the flattened F*E axis (matches PyTorch):
    # K/8 full-width vreg adds per reduction, lane-dense [1, TB] results.
    s = jnp.sum(x, axis=0, keepdims=True)
    sq = jnp.sum(x * x, axis=0, keepdims=True)
    cross = 0.5 * (s * s - sq)

    out_ref[...] = jax.nn.sigmoid(lin + cross).astype(out_ref.dtype)


def fm_pallas(dense_input, sparse_embed_t, w, b):
    """FM forward.

    dense_input    : [B, D]  f32
    sparse_embed_t : [K, B]  (bf16 recommended)  concatenated embeddings, transposed
    w              : [D, 1]  f32 ; b scalar-shaped f32
    returns        : [B, 1]  f32
    """
    B, D = dense_input.shape
    K, B2 = sparse_embed_t.shape
    assert B2 == B, "sparse_embed_t must be [F*E, B]"

    tb = _choose_tile_b(B, K, D, jnp.dtype(sparse_embed_t.dtype).itemsize)
    grid = (pl.cdiv(B, tb),)   # no jnp.pad: last tile is partial, rows past B sliced

    # Dense stream is tiny (D rows); transpose + f32 keep the linear term exact
    # and the VMEM block sublane-packed instead of lane-padded to 128.
    dense_t = jnp.asarray(dense_input, jnp.float32).T    # [D, B]
    w_col = jnp.asarray(w, jnp.float32).reshape(D, 1)
    b_sc = jnp.asarray(b, jnp.float32).reshape(1, 1)

    out_row = pl.pallas_call(
        fm_kernel,
        out_shape=jax.ShapeDtypeStruct((1, B), jnp.float32),
        grid_spec=pltpu.PrefetchScalarGridSpec(
            num_scalar_prefetch=0,
            grid=grid,
            in_specs=[
                pl.BlockSpec((D, tb), lambda i: (0, i)),    # dense tile  [D, tb]
                pl.BlockSpec((K, tb), lambda i: (0, i)),    # embeddings  [K, tb]
                pl.BlockSpec((D, 1), lambda i: (0, 0)),     # weight column (resident)
                pl.BlockSpec(memory_space=pltpu.MemorySpace.SMEM),  # bias scalar
            ],
            out_specs=pl.BlockSpec((1, tb), lambda i: (0, i)),  # lane-dense row
        ),
        compiler_params=pltpu.CompilerParams(
            dimension_semantics=("parallel",),   # v7x: 2 TCs split the batch tiles
            vmem_limit_bytes=48 << 20,           # safe on v7x 64 MiB; ample on v5e/v6e
        ),
    )(dense_t, sparse_embed_t, w_col, b_sc)

    return out_row.reshape(B, 1)


def make_params(key, dense_size, sparse_feat_nums, embed_dim):
    """Parameter init mirroring the PyTorch __init__ shapes.

    Embedding tables are stored in bf16 (one-time parameter cast) so the
    per-forward gather emits the bf16 stream directly — no standalone
    f32->bf16 activation pass over the [B, F*E] slab.
    """
    keys = jax.random.split(key, len(sparse_feat_nums) + 2)
    embed_tables = []
    for i, n in enumerate(sparse_feat_nums):
        std = math.sqrt(2.0 / (n + embed_dim))   # xavier_normal_, gain=1
        tbl = std * jax.random.normal(keys[i], (n, embed_dim), dtype=jnp.float32)
        embed_tables.append(tbl.astype(jnp.bfloat16))
    bound = 1.0 / math.sqrt(dense_size)          # PyTorch Linear default init
    w = jax.random.uniform(keys[-2], (dense_size, 1), minval=-bound, maxval=bound,
                           dtype=jnp.float32)
    b = jax.random.uniform(keys[-1], (1, 1), minval=-bound, maxval=bound,
                           dtype=jnp.float32)
    return embed_tables, w, b


def embed_lookup_t(embed_tables, sparse_input):
    """Glue: per-feature embedding gather, written transposed as [F*E, B]."""
    cols = [
        jnp.take(tbl, sparse_input[:, i], axis=0).T            # [E, B]
        for i, tbl in enumerate(embed_tables)
    ]
    return jnp.concatenate(cols, axis=0)                        # [F*E, B]


def fm_reference(dense_input, sparse_embed, w, b):
    """Pure-JAX reference on [B, K] inputs (f32 math)."""
    lin = dense_input @ w + jnp.reshape(b, (1, 1))
    s = jnp.sum(sparse_embed, axis=1, keepdims=True)
    sq = jnp.sum(sparse_embed ** 2, axis=1, keepdims=True)
    return jax.nn.sigmoid(lin + 0.5 * (s * s - sq))


if __name__ == "__main__":
    # Small shapes consistent with the module's forward.
    B = 8                              # batch
    DENSE = 4                          # len(dense_feature_columns)
    SPARSE_FEAT_NUMS = [10, 20, 30]    # feat_num per sparse feature
    EMBED_DIM = 8                      # K = F*E = 24

    key = jax.random.PRNGKey(0)
    k_param, k_dense, k_sparse = jax.random.split(key, 3)

    embed_tables, w, b = make_params(k_param, DENSE, SPARSE_FEAT_NUMS, EMBED_DIM)

    dense_input = jax.random.normal(k_dense, (B, DENSE), dtype=jnp.float32)
    sparse_keys = jax.random.split(k_sparse, len(SPARSE_FEAT_NUMS))
    sparse_input = jnp.stack(
        [jax.random.randint(sparse_keys[i], (B,), 0, n)
         for i, n in enumerate(SPARSE_FEAT_NUMS)],
        axis=1,
    ).astype(jnp.int32)                # [B, F]

    # Glue: embedding gather + concat, emitted bf16 and transposed [K, B].
    sparse_embed_t = embed_lookup_t(embed_tables, sparse_input)

    # Pallas hot path.
    out = fm_pallas(dense_input, sparse_embed_t, w, b)
    out = jax.block_until_ready(out)

    # Reference uses the SAME bf16-stored embedding parameters upcast to f32
    # (parameters live in bf16 by design; both sides accumulate in f32).
    # NOTE(precision): the cross term 0.5*(s^2 - sum x^2) is cancellation-prone;
    # if full-f32 parity with the PyTorch f32 module is required, store the
    # tables in f32 and stream the sparse slab in f32 (bandwidth-rich v7x).
    sparse_f32 = sparse_embed_t.astype(jnp.float32).T          # [B, K]
    ref = fm_reference(dense_input, sparse_f32, w, b)
    assert out.shape == (B, 1)
    assert jnp.allclose(out, ref, atol=1e-5, rtol=1e-5)

    print("KERNEL_OK")
</pallas_src>

<mosaic_0001>
module attributes {stable_mosaic.version = 11 : i64} {
  func.func @fm_kernel(%arg0: i32, %arg1: memref<4x8xf32, #tpu.memory_space<vmem>>, %arg2: memref<24x8xbf16, #tpu.memory_space<vmem>>, %arg3: memref<4x1xf32, #tpu.memory_space<vmem>>, %arg4: memref<1x1xf32, #tpu.memory_space<smem>>, %arg5: memref<1x8xf32, #tpu.memory_space<vmem>>) attributes {dimension_semantics = [#tpu.dimension_semantics<parallel>], iteration_bounds = array<i64: 1>, scalar_prefetch = 0 : i64, scratch_operands = 0 : i64, tpu.core_type = #tpu.core_type<tc>, window_params = [{transform_indices = @transform_0, window_bounds = array<i64: 4, 8>}, {transform_indices = @transform_1, window_bounds = array<i64: 24, 8>}, {pipeline_mode = #tpu.pipeline_mode<synchronous>, transform_indices = @transform_2, window_bounds = array<i64: 4, 1>}, {transform_indices = @transform_3, window_bounds = array<i64: 1, 1>}, {transform_indices = @transform_4, window_bounds = array<i64: 1, 8>}]} {
    %c0 = arith.constant 0 : index
    %c0_0 = arith.constant 0 : index
    %0 = vector.load %arg2[%c0, %c0_0] : memref<24x8xbf16, #tpu.memory_space<vmem>>, vector<24x8xbf16>
    %1 = arith.extf %0 : vector<24x8xbf16> to vector<24x8xf32>
    %c0_1 = arith.constant 0 : index
    %c0_2 = arith.constant 0 : index
    %2 = vector.load %arg1[%c0_1, %c0_2] : memref<4x8xf32, #tpu.memory_space<vmem>>, vector<4x8xf32>
    %c0_3 = arith.constant 0 : index
    %c0_4 = arith.constant 0 : index
    %3 = vector.load %arg3[%c0_3, %c0_4] : memref<4x1xf32, #tpu.memory_space<vmem>>, vector<4x1xf32>
    %4 = vector.broadcast %3 : vector<4x1xf32> to vector<4x8xf32>
    %5 = arith.mulf %2, %4 : vector<4x8xf32>
    %cst = arith.constant dense<0.000000e+00> : vector<8xf32>
    %6 = vector.multi_reduction <add>, %5, %cst [0] : vector<4x8xf32> to vector<8xf32>
    %7 = vector.shape_cast %6 : vector<8xf32> to vector<1x8xf32>
    %c0_5 = arith.constant 0 : index
    %c0_6 = arith.constant 0 : index
    %8 = memref.load %arg4[%c0_5, %c0_6] : memref<1x1xf32, #tpu.memory_space<smem>>
    %9 = vector.broadcast %8 : f32 to vector<1x8xf32>
    %10 = arith.addf %7, %9 : vector<1x8xf32>
    %cst_7 = arith.constant dense<0.000000e+00> : vector<8xf32>
    %11 = vector.multi_reduction <add>, %1, %cst_7 [0] : vector<24x8xf32> to vector<8xf32>
    %12 = vector.shape_cast %11 : vector<8xf32> to vector<1x8xf32>
    %13 = arith.mulf %1, %1 : vector<24x8xf32>
    %cst_8 = arith.constant dense<0.000000e+00> : vector<8xf32>
    %14 = vector.multi_reduction <add>, %13, %cst_8 [0] : vector<24x8xf32> to vector<8xf32>
    %15 = vector.shape_cast %14 : vector<8xf32> to vector<1x8xf32>
    %16 = arith.mulf %12, %12 : vector<1x8xf32>
    %17 = arith.subf %16, %15 : vector<1x8xf32>
    %cst_9 = arith.constant 5.000000e-01 : f32
    %18 = vector.broadcast %cst_9 : f32 to vector<1x8xf32>
    %19 = arith.mulf %18, %17 : vector<1x8xf32>
    %20 = arith.addf %10, %19 : vector<1x8xf32>
    %21 = arith.negf %20 : vector<1x8xf32>
    %22 = math.exp %21 : vector<1x8xf32>
    %cst_10 = arith.constant 1.000000e+00 : f32
    %23 = vector.broadcast %cst_10 : f32 to vector<1x8xf32>
    %24 = arith.addf %23, %22 : vector<1x8xf32>
    %25 = arith.divf %23, %24 : vector<1x8xf32>
    %c0_11 = arith.constant 0 : index
    %c0_12 = arith.constant 0 : index
    %26 = vector.load %arg5[%c0_11, %c0_12] : memref<1x8xf32, #tpu.memory_space<vmem>>, vector<1x8xf32>
    tpu.vector_store %arg5[%c0_11, %c0_12], %25 {strides = array<i32>} : memref<1x8xf32, #tpu.memory_space<vmem>>, vector<1x8xf32>,
    return
  }
  func.func @transform_0(%arg0: i32) -> (i32, i32) {
    %c0_i32 = arith.constant 0 : i32
    %c0_i32_0 = arith.constant 0 : i32
    return %c0_i32, %arg0 : i32, i32
  }
  func.func @transform_1(%arg0: i32) -> (i32, i32) {
    %c0_i32 = arith.constant 0 : i32
    %c0_i32_0 = arith.constant 0 : i32
    return %c0_i32, %arg0 : i32, i32
  }
  func.func @transform_2(%arg0: i32) -> (i32, i32) {
    %c0_i32 = arith.constant 0 : i32
    %c0_i32_0 = arith.constant 0 : i32
    %c0_i32_1 = arith.constant 0 : i32
    return %c0_i32, %c0_i32_0 : i32, i32
  }
  func.func @transform_3(%arg0: i32) -> (i32, i32) {
    %c0_i32 = arith.constant 0 : i32
    %c0_i32_0 = arith.constant 0 : i32
    %c0_i32_1 = arith.constant 0 : i32
    return %c0_i32, %c0_i32_0 : i32, i32
  }
  func.func @transform_4(%arg0: i32) -> (i32, i32) {
    %c0_i32 = arith.constant 0 : i32
    %c0_i32_0 = arith.constant 0 : i32
    return %c0_i32, %arg0 : i32, i32
  }
}

</mosaic_0001>

<bundles_post_ra>
// kernel: tpu_custom_call.1
= control target key start
LH: loop header
LB: loop body
LE: loop exit
PB: predicated region body
PF: predicated region fallthrough
CT: control target
= control target key end

     0   :  { %v149_v1 = vmov 0   ;;  %s194_s0 = inlined_call_operand.vmem [shape: f32[4,8], index: 0, kind: input, shape index: {}]   ;;  %s195_s1 = inlined_call_operand.vmem [shape: bf16[24,8], index: 1, kind: input, shape index: {}]   ;;  %s196_s2 = inlined_call_operand.vmem [shape: f32[4,1], index: 2, kind: input, shape index: {}]   ;;  %s197_s3 = inlined_call_operand.<no memory space> [shape: f32[1,1], index: 3, kind: input, shape index: {}]   ;;  %s198_s4 = inlined_call_operand.hbm [shape: f32[1,8], index: 4, kind: output, shape index: {}]  }
   0x1   :  { %v26_v0 = vld [vmem:[%s196_s2] sm:$0xf]  ;;  %118 = vset.pattern.permute.xlu0 %v149_v1 }
   0x2   :  { %10 = vsyncpa [#allocation4], 0  ;;  %29 = vperm.xlu0 %118, %v26_v0   ;;  %v113_v2 = vld [vmem:[%s195_s1] sm:$0xff]   ;;  %v21_v5 = vld [vmem:[%s195_s1 + $0x8] sm:$0xf]  ;;  %vm44_vm0 = vcmask 64512   ;;  %v42_v43 = vstv %s197_s3 }
   0x3   :  { %v114_v3 = vunpack.c.l.bf16 %v113_v2  ;;  %v115_v4 = vunpack.c.h.bf16 %v113_v2  ;;  %v24_v6 = vunpack.c.l.bf16 %v21_v5  ;;  %v25_v27 = vld [vmem:[%s194_s0] sm:$0xf]  ;;  %vm33_vm1 = vcmask 60416   ;;  %s150_s0 = smov [#allocation3]   ;;  %s102_s25 = sshll.u32 %s198_s4, 4  ;;  %s103_s25 = int_to_ptr.hbm [resolvable:$true] %s102_s25 }
   0x4   :  { %s100_s23 = sshll.u32 %s150_s0, 4  ;;  %vm93_vm5 = vcmask 57344   ;;  %s101_s23 = int_to_ptr.vmem [resolvable:$true] %s100_s23 }
   0x5   :  { %v45_v7 = vsel %vm44_vm0, %v114_v3, 0.0  ;;  %v46_v8 = vsel %vm44_vm0, %v115_v4, 0.0  ;;  %v56_v9 = vmul.f32 %v114_v3, %v114_v3  ;;  %v57_v10 = vmul.f32 %v115_v4, %v115_v4 }
   0x6   :  { %v47_v11 = vadd.f32 %v46_v8, %v45_v7  ;;  %v48_v12 = vsel %vm44_vm0, %v24_v6, 0.0  ;;  %v58_v13 = vmul.f32 %v24_v6, %v24_v6 }
   0x7   :  { %v59_v14 = vsel %vm44_vm0, %v56_v9, 0.0  ;;  %v60_v15 = vsel %vm44_vm0, %v57_v10, 0.0 }
   0x8   :  { %v49_v16 = vadd.f32 %v48_v12, %v47_v11  ;;  %v61_v17 = vadd.f32 %v60_v15, %v59_v14  ;;  %v62_v18 = vsel %vm44_vm0, %v58_v13, 0.0 }
   0xa   :  { %v50_v19 = vrot.slane %v49_v16, 4  ;;  %v63_v20 = vadd.f32 %v62_v18, %v61_v17 }
   0xc   :  { %v51_v21 = vadd.f32 %v50_v19, %v49_v16  ;;  %v64_v22 = vrot.slane %v63_v20, 4 }
   0xe   :  { %v52_v23 = vrot.slane %v51_v21, 2  ;;  %v65_v24 = vadd.f32 %v64_v22, %v63_v20 }
  0x10   :  { %v53_v25 = vadd.f32 %v52_v23, %v51_v21  ;;  %v66_v26 = vrot.slane %v65_v24, 2 }
  0x12   :  { %v54_v28 = vrot.slane %v53_v25, 1  ;;  %v67_v29 = vadd.f32 %v66_v26, %v65_v24 }
  0x14   :  { %v55_v32 = vadd.f32 %v54_v28, %v53_v25  ;;  %v68_v33 = vrot.slane %v67_v29, 1 }
  0x16   :  { %v69_v37 = vadd.f32 %v68_v33, %v67_v29  ;;  %v70_v38 = vmul.f32 %v55_v32, %v55_v32 }
  0x18   :  { %v71_v41 = vsub.f32 %v70_v38, %v69_v37 }
  0x1a   :  { %v72_v45 = vmul.f32 0.5, %v71_v41 }
  0x74   :  { %v30_v30 = vpop.permute.xlu0 %29 }
  0x75   :  { %v32_v31 = vmul.f32 %v30_v30, %v25_v27 }
  0x77   :  { %v34_v34 = vsel %vm33_vm1, %v32_v31, 0.0 }
  0x78   :  { %v35_v35 = vrot.slane %v34_v34, 4 }
  0x7a   :  { %v36_v36 = vadd.f32 %v35_v35, %v34_v34 }
  0x7c   :  { %v37_v39 = vrot.slane %v36_v36, 2 }
  0x7e   :  { %v38_v40 = vadd.f32 %v37_v39, %v36_v36 }
  0x80   :  { %v39_v42 = vrot.slane %v38_v40, 1 }
  0x82   :  { %v40_v44 = vadd.f32 %v39_v42, %v38_v40 }
  0x84   :  { %v43_v46 = vadd.f32 %v42_v43, %v40_v44 }
  0x86   :  { %v73_v47 = vadd.f32 %v72_v45, %v43_v46 }
  0x88   :  { %v111_v48 = vmul.f32 -1.442695, %v73_v47 }
  0x8a   :  { %119 = vpow2.f32 %v111_v48 }
  0x90   :  { %v120_v49 = vpop.eup %119 }
  0x91   :  { %v77_v50 = vadd.f32 1.0, %v120_v49 }
  0x93   :  { %121 = vrcp.f32 %v77_v50  ;;  %v89_v54 = vand.u32 2147483648, %v77_v50  ;;  %v87_v56 = vand.u32 2147483647, %v77_v50  ;;  %vm83_vm3 = vweird.f32 %v77_v50 }
  0x95   :  { %v90_v58 = vor.u32 1.1754944e-38, %v89_v54  ;;  %vm88_vm6 = vcmp.eq.f32.partialorder %v87_v56, 8.507059e+37 }
  0x99   :  { %v122_v51 = vpop.eup %121 }
  0x9a   :  { %v79_v52 = vmul.f32 %v122_v51, %v77_v50  ;;  %vm84_vm2 = vweird.f32 %v122_v51 }
  0x9b   :  { %vm85_vm4 = vmor %vm83_vm3, %vm84_vm2 }
  0x9c   :  { %v80_v53 = vsub.f32 1.0, %v79_v52 }
  0x9e   :  { %v81_v55 = vmul.f32 %v122_v51, %v80_v53 }
  0xa0   :  { %v82_v57 = vadd.f32 %v122_v51, %v81_v55 }
  0xa2   :  { %v86_v59 = vsel %vm85_vm4, %v122_v51, %v82_v57 }
  0xa3   :  { %v91_v60 = vsel %vm88_vm6, %v90_v58, %v86_v59 }
  0xa4   :  { %94 = vst.msk [vmem:[#allocation3] sm:$0x1] %vm93_vm5, %v91_v60 }
  0xa5   :  { %105 = dma.vmem_to_hbm [thread:$0]  %s101_s23, 16, %s103_s25, [#allocation4]  }
  0xa6   :  { %147 = dma.done.wait [#allocation4], 16  }
  0xa7   :  { %148 = vsyncadd [#allocation4], 4294967280 }
  0xa8   :  { %110 = vsyncpa [#allocation4], 1 }

</bundles_post_ra>
